<compile_context>
chip_gen: v5e
topology: v5e:2x2
jax: 0.10.0
libtpu: 0.0.40
codegen_flags: <defaults>
</compile_context>

<pallas_src>
import jax
import jax.numpy as jnp
from jax.experimental import pallas as pl
from jax.experimental.pallas import tpu as pltpu


# ---------------------------------------------------------------------------
# Parameter slab layout: all weights/biases packed into one (8, 128) f32 tile.
#   lane k in [W?, W?+n_in): column of weights for input feature k
#                            (rows = output units, zero-padded to 8 sublanes)
#   lane B?: bias column (rows = output units, zero-padded)
# ---------------------------------------------------------------------------
_W1, _B1 = 0, 8      # layer 1: 8 input features, 6 output units
_W2, _B2 = 16, 22    # layer 2: 6 input features, 4 output units
_W3, _B3 = 24, 28    # layer 3: 4 input features, 1 output unit


def mlp_kernel(x_ref, p_ref, o_ref):
    """x_ref: (8, TB) transposed activations (features on sublanes, batch on lanes).
    p_ref: (8, 128) packed parameter slab.  o_ref: (1, TB) lane-dense output."""

    def pcol(i):
        return p_ref[:, i:i + 1]                      # (8, 1) parameter column

    def dense(h, n_in, w_off, b_off):
        # h: (8, TB), rows 0..n_in-1 valid.  Output: (8, TB), rows = out units.
        acc = pcol(w_off) * h[0:1, :]                 # (8,1)*(1,TB) -> (8,TB) on VPU
        for k in range(1, n_in):
            acc = acc + pcol(w_off + k) * h[k:k + 1, :]
        acc = acc + pcol(b_off)                       # bias, lane-broadcast
        # sigmoid(z) == 0.5*tanh(0.5*z) + 0.5  -> single EUP transcendental
        return 0.5 * jnp.tanh(0.5 * acc) + 0.5

    x = x_ref[...]                                    # (8, TB) f32
    h1 = dense(x, 8, _W1, _B1)                        # rows 0..5 valid
    h2 = dense(h1, 6, _W2, _B2)                       # rows 0..3 valid
    h3 = dense(h2, 4, _W3, _B3)                       # row 0 valid
    o_ref[...] = h3[0:1, :].astype(o_ref.dtype)       # lane-dense (1, TB) store


def _round_up(n, m):
    return ((n + m - 1) // m) * m


def mlp_forward(x, param_slab, *, tile_b=1024):
    """x: (B, 8) f32.  param_slab: (8, 128) f32 packed params.  Returns (B, 1)."""
    B = x.shape[0]
    tb = min(tile_b, _round_up(max(B, 1), 128))       # lane-tile of batch (mult of 128)
    Bp = _round_up(B, tb)
    nb = Bp // tb

    # Layout plumbing: batch onto the lane axis, zero-pad to the tile size.
    xt = jnp.zeros((8, Bp), jnp.float32).at[:, :B].set(x.astype(jnp.float32).T)

    yt = pl.pallas_call(
        mlp_kernel,
        out_shape=jax.ShapeDtypeStruct((1, Bp), jnp.float32),
        grid=(nb,),
        in_specs=[
            pl.BlockSpec((8, tb), lambda i: (0, i)),      # x tile (batch on lanes)
            pl.BlockSpec((8, 128), lambda i: (0, 0)),     # param slab, resident
        ],
        out_specs=pl.BlockSpec((1, tb), lambda i: (0, i)),  # lane-dense output slab
        compiler_params=pltpu.CompilerParams(
            dimension_semantics=("parallel",),            # megacore on v7x
            vmem_limit_bytes=32 * 1024 * 1024,            # safe under v7x 64 MiB VMEM
        ),
    )(xt, param_slab)

    return yt[0, :B].reshape(B, 1)


# ---------------------------------------------------------------------------
# Parameter construction / packing / reference
# ---------------------------------------------------------------------------
def init_params(key):
    """torch.nn.Linear-style init: W (out,in), b (out,), U(-1/sqrt(fan_in), 1/sqrt(fan_in))."""
    dims = [(8, 6), (6, 4), (4, 1)]   # (fan_in, fan_out)
    params = {}
    for i, (fan_in, fan_out) in enumerate(dims, start=1):
        key, kw, kb = jax.random.split(key, 3)
        bound = 1.0 / (fan_in ** 0.5)
        params[f"w{i}"] = jax.random.uniform(
            kw, (fan_out, fan_in), jnp.float32, -bound, bound)
        params[f"b{i}"] = jax.random.uniform(
            kb, (fan_out,), jnp.float32, -bound, bound)
    return params


def pack_params(params):
    """Pack all weights/biases into a single (8, 128) f32 slab (zero padded)."""
    slab = jnp.zeros((8, 128), jnp.float32)
    slab = slab.at[0:6, _W1:_W1 + 8].set(params["w1"])   # (6, 8)
    slab = slab.at[0:6, _B1].set(params["b1"])
    slab = slab.at[0:4, _W2:_W2 + 6].set(params["w2"])   # (4, 6)
    slab = slab.at[0:4, _B2].set(params["b2"])
    slab = slab.at[0:1, _W3:_W3 + 4].set(params["w3"])   # (1, 4)
    slab = slab.at[0:1, _B3].set(params["b3"])
    return slab


def reference_forward(x, params):
    h = jax.nn.sigmoid(x @ params["w1"].T + params["b1"])
    h = jax.nn.sigmoid(h @ params["w2"].T + params["b2"])
    return jax.nn.sigmoid(h @ params["w3"].T + params["b3"])


if __name__ == "__main__":
    key = jax.random.PRNGKey(0)
    key, kx = jax.random.split(key)

    batch = 8
    x = jax.random.normal(kx, (batch, 8), jnp.float32)

    params = init_params(key)
    slab = pack_params(params)

    out = jax.block_until_ready(mlp_forward(x, slab))
    ref = reference_forward(x, params)

    assert out.shape == (batch, 1), out.shape
    assert jnp.allclose(out, ref, atol=1e-5, rtol=1e-5), "mismatch vs reference"

    print("KERNEL_OK")
</pallas_src>

<mosaic_0001>
module attributes {stable_mosaic.version = 11 : i64} {
  func.func @mlp_kernel(%arg0: i32, %arg1: memref<8x128xf32, #tpu.memory_space<vmem>>, %arg2: memref<8x128xf32, #tpu.memory_space<vmem>>, %arg3: memref<1x128xf32, #tpu.memory_space<vmem>>) attributes {dimension_semantics = [#tpu.dimension_semantics<parallel>], iteration_bounds = array<i64: 1>, scalar_prefetch = 0 : i64, scratch_operands = 0 : i64, tpu.core_type = #tpu.core_type<tc>, window_params = [{transform_indices = @transform_0, window_bounds = array<i64: 8, 128>}, {pipeline_mode = #tpu.pipeline_mode<synchronous>, transform_indices = @transform_1, window_bounds = array<i64: 8, 128>}, {transform_indices = @transform_2, window_bounds = array<i64: 1, 128>}]} {
    %c0 = arith.constant 0 : index
    %c0_0 = arith.constant 0 : index
    %0 = vector.load %arg1[%c0, %c0_0] : memref<8x128xf32, #tpu.memory_space<vmem>>, vector<8x128xf32>
    %c0_1 = arith.constant 0 : index
    %c0_2 = arith.constant 0 : index
    %1 = vector.load %arg2[%c0_1, %c0_2] : memref<8x128xf32, #tpu.memory_space<vmem>>, vector<8x1xf32>
    %2 = vector.extract_strided_slice %0 {offsets = [0, 0], sizes = [1, 128], strides = [1, 1]} : vector<8x128xf32> to vector<1x128xf32>
    %3 = vector.broadcast %1 : vector<8x1xf32> to vector<8x128xf32>
    %4 = vector.broadcast %2 : vector<1x128xf32> to vector<8x128xf32>
    %5 = arith.mulf %3, %4 : vector<8x128xf32>
    %c0_3 = arith.constant 0 : index
    %c1 = arith.constant 1 : index
    %6 = vector.load %arg2[%c0_3, %c1] : memref<8x128xf32, #tpu.memory_space<vmem>>, vector<8x1xf32>
    %7 = vector.extract_strided_slice %0 {offsets = [1, 0], sizes = [1, 128], strides = [1, 1]} : vector<8x128xf32> to vector<1x128xf32>
    %8 = vector.broadcast %6 : vector<8x1xf32> to vector<8x128xf32>
    %9 = vector.broadcast %7 : vector<1x128xf32> to vector<8x128xf32>
    %10 = arith.mulf %8, %9 : vector<8x128xf32>
    %11 = arith.addf %5, %10 : vector<8x128xf32>
    %c0_4 = arith.constant 0 : index
    %c2 = arith.constant 2 : index
    %12 = vector.load %arg2[%c0_4, %c2] : memref<8x128xf32, #tpu.memory_space<vmem>>, vector<8x1xf32>
    %13 = vector.extract_strided_slice %0 {offsets = [2, 0], sizes = [1, 128], strides = [1, 1]} : vector<8x128xf32> to vector<1x128xf32>
    %14 = vector.broadcast %12 : vector<8x1xf32> to vector<8x128xf32>
    %15 = vector.broadcast %13 : vector<1x128xf32> to vector<8x128xf32>
    %16 = arith.mulf %14, %15 : vector<8x128xf32>
    %17 = arith.addf %11, %16 : vector<8x128xf32>
    %c0_5 = arith.constant 0 : index
    %c3 = arith.constant 3 : index
    %18 = vector.load %arg2[%c0_5, %c3] : memref<8x128xf32, #tpu.memory_space<vmem>>, vector<8x1xf32>
    %19 = vector.extract_strided_slice %0 {offsets = [3, 0], sizes = [1, 128], strides = [1, 1]} : vector<8x128xf32> to vector<1x128xf32>
    %20 = vector.broadcast %18 : vector<8x1xf32> to vector<8x128xf32>
    %21 = vector.broadcast %19 : vector<1x128xf32> to vector<8x128xf32>
    %22 = arith.mulf %20, %21 : vector<8x128xf32>
    %23 = arith.addf %17, %22 : vector<8x128xf32>
    %c0_6 = arith.constant 0 : index
    %c4 = arith.constant 4 : index
    %24 = vector.load %arg2[%c0_6, %c4] : memref<8x128xf32, #tpu.memory_space<vmem>>, vector<8x1xf32>
    %25 = vector.extract_strided_slice %0 {offsets = [4, 0], sizes = [1, 128], strides = [1, 1]} : vector<8x128xf32> to vector<1x128xf32>
    %26 = vector.broadcast %24 : vector<8x1xf32> to vector<8x128xf32>
    %27 = vector.broadcast %25 : vector<1x128xf32> to vector<8x128xf32>
    %28 = arith.mulf %26, %27 : vector<8x128xf32>
    %29 = arith.addf %23, %28 : vector<8x128xf32>
    %c0_7 = arith.constant 0 : index
    %c5 = arith.constant 5 : index
    %30 = vector.load %arg2[%c0_7, %c5] : memref<8x128xf32, #tpu.memory_space<vmem>>, vector<8x1xf32>
    %31 = vector.extract_strided_slice %0 {offsets = [5, 0], sizes = [1, 128], strides = [1, 1]} : vector<8x128xf32> to vector<1x128xf32>
    %32 = vector.broadcast %30 : vector<8x1xf32> to vector<8x128xf32>
    %33 = vector.broadcast %31 : vector<1x128xf32> to vector<8x128xf32>
    %34 = arith.mulf %32, %33 : vector<8x128xf32>
    %35 = arith.addf %29, %34 : vector<8x128xf32>
    %c0_8 = arith.constant 0 : index
    %c6 = arith.constant 6 : index
    %36 = vector.load %arg2[%c0_8, %c6] : memref<8x128xf32, #tpu.memory_space<vmem>>, vector<8x1xf32>
    %37 = vector.extract_strided_slice %0 {offsets = [6, 0], sizes = [1, 128], strides = [1, 1]} : vector<8x128xf32> to vector<1x128xf32>
    %38 = vector.broadcast %36 : vector<8x1xf32> to vector<8x128xf32>
    %39 = vector.broadcast %37 : vector<1x128xf32> to vector<8x128xf32>
    %40 = arith.mulf %38, %39 : vector<8x128xf32>
    %41 = arith.addf %35, %40 : vector<8x128xf32>
    %c0_9 = arith.constant 0 : index
    %c7 = arith.constant 7 : index
    %42 = vector.load %arg2[%c0_9, %c7] : memref<8x128xf32, #tpu.memory_space<vmem>>, vector<8x1xf32>
    %43 = vector.extract_strided_slice %0 {offsets = [7, 0], sizes = [1, 128], strides = [1, 1]} : vector<8x128xf32> to vector<1x128xf32>
    %44 = vector.broadcast %42 : vector<8x1xf32> to vector<8x128xf32>
    %45 = vector.broadcast %43 : vector<1x128xf32> to vector<8x128xf32>
    %46 = arith.mulf %44, %45 : vector<8x128xf32>
    %47 = arith.addf %41, %46 : vector<8x128xf32>
    %c0_10 = arith.constant 0 : index
    %c8 = arith.constant 8 : index
    %48 = vector.load %arg2[%c0_10, %c8] : memref<8x128xf32, #tpu.memory_space<vmem>>, vector<8x1xf32>
    %49 = vector.broadcast %48 : vector<8x1xf32> to vector<8x128xf32>
    %50 = arith.addf %47, %49 : vector<8x128xf32>
    %cst = arith.constant 5.000000e-01 : f32
    %51 = vector.broadcast %cst : f32 to vector<8x128xf32>
    %52 = arith.mulf %51, %50 : vector<8x128xf32>
    %53 = math.tanh %52 : vector<8x128xf32>
    %cst_11 = arith.constant 5.000000e-01 : f32
    %54 = vector.broadcast %cst_11 : f32 to vector<8x128xf32>
    %55 = arith.mulf %54, %53 : vector<8x128xf32>
    %cst_12 = arith.constant 5.000000e-01 : f32
    %56 = vector.broadcast %cst_12 : f32 to vector<8x128xf32>
    %57 = arith.addf %55, %56 : vector<8x128xf32>
    %c0_13 = arith.constant 0 : index
    %c16 = arith.constant 16 : index
    %58 = vector.load %arg2[%c0_13, %c16] : memref<8x128xf32, #tpu.memory_space<vmem>>, vector<8x1xf32>
    %59 = vector.extract_strided_slice %57 {offsets = [0, 0], sizes = [1, 128], strides = [1, 1]} : vector<8x128xf32> to vector<1x128xf32>
    %60 = vector.broadcast %58 : vector<8x1xf32> to vector<8x128xf32>
    %61 = vector.broadcast %59 : vector<1x128xf32> to vector<8x128xf32>
    %62 = arith.mulf %60, %61 : vector<8x128xf32>
    %c0_14 = arith.constant 0 : index
    %c17 = arith.constant 17 : index
    %63 = vector.load %arg2[%c0_14, %c17] : memref<8x128xf32, #tpu.memory_space<vmem>>, vector<8x1xf32>
    %64 = vector.extract_strided_slice %57 {offsets = [1, 0], sizes = [1, 128], strides = [1, 1]} : vector<8x128xf32> to vector<1x128xf32>
    %65 = vector.broadcast %63 : vector<8x1xf32> to vector<8x128xf32>
    %66 = vector.broadcast %64 : vector<1x128xf32> to vector<8x128xf32>
    %67 = arith.mulf %65, %66 : vector<8x128xf32>
    %68 = arith.addf %62, %67 : vector<8x128xf32>
    %c0_15 = arith.constant 0 : index
    %c18 = arith.constant 18 : index
    %69 = vector.load %arg2[%c0_15, %c18] : memref<8x128xf32, #tpu.memory_space<vmem>>, vector<8x1xf32>
    %70 = vector.extract_strided_slice %57 {offsets = [2, 0], sizes = [1, 128], strides = [1, 1]} : vector<8x128xf32> to vector<1x128xf32>
    %71 = vector.broadcast %69 : vector<8x1xf32> to vector<8x128xf32>
    %72 = vector.broadcast %70 : vector<1x128xf32> to vector<8x128xf32>
    %73 = arith.mulf %71, %72 : vector<8x128xf32>
    %74 = arith.addf %68, %73 : vector<8x128xf32>
    %c0_16 = arith.constant 0 : index
    %c19 = arith.constant 19 : index
    %75 = vector.load %arg2[%c0_16, %c19] : memref<8x128xf32, #tpu.memory_space<vmem>>, vector<8x1xf32>
    %76 = vector.extract_strided_slice %57 {offsets = [3, 0], sizes = [1, 128], strides = [1, 1]} : vector<8x128xf32> to vector<1x128xf32>
    %77 = vector.broadcast %75 : vector<8x1xf32> to vector<8x128xf32>
    %78 = vector.broadcast %76 : vector<1x128xf32> to vector<8x128xf32>
    %79 = arith.mulf %77, %78 : vector<8x128xf32>
    %80 = arith.addf %74, %79 : vector<8x128xf32>
    %c0_17 = arith.constant 0 : index
    %c20 = arith.constant 20 : index
    %81 = vector.load %arg2[%c0_17, %c20] : memref<8x128xf32, #tpu.memory_space<vmem>>, vector<8x1xf32>
    %82 = vector.extract_strided_slice %57 {offsets = [4, 0], sizes = [1, 128], strides = [1, 1]} : vector<8x128xf32> to vector<1x128xf32>
    %83 = vector.broadcast %81 : vector<8x1xf32> to vector<8x128xf32>
    %84 = vector.broadcast %82 : vector<1x128xf32> to vector<8x128xf32>
    %85 = arith.mulf %83, %84 : vector<8x128xf32>
    %86 = arith.addf %80, %85 : vector<8x128xf32>
    %c0_18 = arith.constant 0 : index
    %c21 = arith.constant 21 : index
    %87 = vector.load %arg2[%c0_18, %c21] : memref<8x128xf32, #tpu.memory_space<vmem>>, vector<8x1xf32>
    %88 = vector.extract_strided_slice %57 {offsets = [5, 0], sizes = [1, 128], strides = [1, 1]} : vector<8x128xf32> to vector<1x128xf32>
    %89 = vector.broadcast %87 : vector<8x1xf32> to vector<8x128xf32>
    %90 = vector.broadcast %88 : vector<1x128xf32> to vector<8x128xf32>
    %91 = arith.mulf %89, %90 : vector<8x128xf32>
    %92 = arith.addf %86, %91 : vector<8x128xf32>
    %c0_19 = arith.constant 0 : index
    %c22 = arith.constant 22 : index
    %93 = vector.load %arg2[%c0_19, %c22] : memref<8x128xf32, #tpu.memory_space<vmem>>, vector<8x1xf32>
    %94 = vector.broadcast %93 : vector<8x1xf32> to vector<8x128xf32>
    %95 = arith.addf %92, %94 : vector<8x128xf32>
    %cst_20 = arith.constant 5.000000e-01 : f32
    %96 = vector.broadcast %cst_20 : f32 to vector<8x128xf32>
    %97 = arith.mulf %96, %95 : vector<8x128xf32>
    %98 = math.tanh %97 : vector<8x128xf32>
    %cst_21 = arith.constant 5.000000e-01 : f32
    %99 = vector.broadcast %cst_21 : f32 to vector<8x128xf32>
    %100 = arith.mulf %99, %98 : vector<8x128xf32>
    %cst_22 = arith.constant 5.000000e-01 : f32
    %101 = vector.broadcast %cst_22 : f32 to vector<8x128xf32>
    %102 = arith.addf %100, %101 : vector<8x128xf32>
    %c0_23 = arith.constant 0 : index
    %c24 = arith.constant 24 : index
    %103 = vector.load %arg2[%c0_23, %c24] : memref<8x128xf32, #tpu.memory_space<vmem>>, vector<8x1xf32>
    %104 = vector.extract_strided_slice %102 {offsets = [0, 0], sizes = [1, 128], strides = [1, 1]} : vector<8x128xf32> to vector<1x128xf32>
    %105 = vector.broadcast %103 : vector<8x1xf32> to vector<8x128xf32>
    %106 = vector.broadcast %104 : vector<1x128xf32> to vector<8x128xf32>
    %107 = arith.mulf %105, %106 : vector<8x128xf32>
    %c0_24 = arith.constant 0 : index
    %c25 = arith.constant 25 : index
    %108 = vector.load %arg2[%c0_24, %c25] : memref<8x128xf32, #tpu.memory_space<vmem>>, vector<8x1xf32>
    %109 = vector.extract_strided_slice %102 {offsets = [1, 0], sizes = [1, 128], strides = [1, 1]} : vector<8x128xf32> to vector<1x128xf32>
    %110 = vector.broadcast %108 : vector<8x1xf32> to vector<8x128xf32>
    %111 = vector.broadcast %109 : vector<1x128xf32> to vector<8x128xf32>
    %112 = arith.mulf %110, %111 : vector<8x128xf32>
    %113 = arith.addf %107, %112 : vector<8x128xf32>
    %c0_25 = arith.constant 0 : index
    %c26 = arith.constant 26 : index
    %114 = vector.load %arg2[%c0_25, %c26] : memref<8x128xf32, #tpu.memory_space<vmem>>, vector<8x1xf32>
    %115 = vector.extract_strided_slice %102 {offsets = [2, 0], sizes = [1, 128], strides = [1, 1]} : vector<8x128xf32> to vector<1x128xf32>
    %116 = vector.broadcast %114 : vector<8x1xf32> to vector<8x128xf32>
    %117 = vector.broadcast %115 : vector<1x128xf32> to vector<8x128xf32>
    %118 = arith.mulf %116, %117 : vector<8x128xf32>
    %119 = arith.addf %113, %118 : vector<8x128xf32>
    %c0_26 = arith.constant 0 : index
    %c27 = arith.constant 27 : index
    %120 = vector.load %arg2[%c0_26, %c27] : memref<8x128xf32, #tpu.memory_space<vmem>>, vector<8x1xf32>
    %121 = vector.extract_strided_slice %102 {offsets = [3, 0], sizes = [1, 128], strides = [1, 1]} : vector<8x128xf32> to vector<1x128xf32>
    %122 = vector.broadcast %120 : vector<8x1xf32> to vector<8x128xf32>
    %123 = vector.broadcast %121 : vector<1x128xf32> to vector<8x128xf32>
    %124 = arith.mulf %122, %123 : vector<8x128xf32>
    %125 = arith.addf %119, %124 : vector<8x128xf32>
    %c0_27 = arith.constant 0 : index
    %c28 = arith.constant 28 : index
    %126 = vector.load %arg2[%c0_27, %c28] : memref<8x128xf32, #tpu.memory_space<vmem>>, vector<8x1xf32>
    %127 = vector.broadcast %126 : vector<8x1xf32> to vector<8x128xf32>
    %128 = arith.addf %125, %127 : vector<8x128xf32>
    %cst_28 = arith.constant 5.000000e-01 : f32
    %129 = vector.broadcast %cst_28 : f32 to vector<8x128xf32>
    %130 = arith.mulf %129, %128 : vector<8x128xf32>
    %131 = math.tanh %130 : vector<8x128xf32>
    %cst_29 = arith.constant 5.000000e-01 : f32
    %132 = vector.broadcast %cst_29 : f32 to vector<8x128xf32>
    %133 = arith.mulf %132, %131 : vector<8x128xf32>
    %cst_30 = arith.constant 5.000000e-01 : f32
    %134 = vector.broadcast %cst_30 : f32 to vector<8x128xf32>
    %135 = arith.addf %133, %134 : vector<8x128xf32>
    %136 = vector.extract_strided_slice %135 {offsets = [0, 0], sizes = [1, 128], strides = [1, 1]} : vector<8x128xf32> to vector<1x128xf32>
    %c0_31 = arith.constant 0 : index
    %c0_32 = arith.constant 0 : index
    %137 = vector.load %arg3[%c0_31, %c0_32] : memref<1x128xf32, #tpu.memory_space<vmem>>, vector<1x128xf32>
    tpu.vector_store %arg3[%c0_31, %c0_32], %136 {strides = array<i32>} : memref<1x128xf32, #tpu.memory_space<vmem>>, vector<1x128xf32>,
    return
  }
  func.func @transform_0(%arg0: i32) -> (i32, i32) {
    %c0_i32 = arith.constant 0 : i32
    %c0_i32_0 = arith.constant 0 : i32
    return %c0_i32, %arg0 : i32, i32
  }
  func.func @transform_1(%arg0: i32) -> (i32, i32) {
    %c0_i32 = arith.constant 0 : i32
    %c0_i32_0 = arith.constant 0 : i32
    %c0_i32_1 = arith.constant 0 : i32
    return %c0_i32, %c0_i32_0 : i32, i32
  }
  func.func @transform_2(%arg0: i32) -> (i32, i32) {
    %c0_i32 = arith.constant 0 : i32
    %c0_i32_0 = arith.constant 0 : i32
    return %c0_i32, %arg0 : i32, i32
  }
}

</mosaic_0001>

<bundles_post_ra>
// kernel: tpu_custom_call.1
= control target key start
LH: loop header
LB: loop body
LE: loop exit
PB: predicated region body
PF: predicated region fallthrough
CT: control target
= control target key end

     0   :  { %7 = vsyncpa [#allocation3], 0  ;;  %s390_s0 = inlined_call_operand.hbm [shape: f32[8,128], index: 0, kind: input, shape index: {}]   ;;  %s391_s1 = inlined_call_operand.hbm [shape: f32[8,128], index: 1, kind: input, shape index: {}]   ;;  %s392_s2 = inlined_call_operand.hbm [shape: f32[1,128], index: 2, kind: output, shape index: {}]  }
   0x1   :  { %8 = vsyncpa [#allocation6], 0 }
   0x2   :  { %9 = vsyncpa [#allocation4], 0  ;;  %s15_s11 = sshll.u32 %s390_s0, 4  ;;  %s342_s12 = smov [#allocation2]   ;;  %s16_s11 = int_to_ptr.hbm [resolvable:$true] %s15_s11 }
   0x3   :  { %s17_s13 = sshll.u32 %s342_s12, 4  ;;  %s26_s16 = sshll.u32 %s391_s1, 4  ;;  %s18_s13 = int_to_ptr.vmem [resolvable:$true] %s17_s13  ;;  %s27_s16 = int_to_ptr.hbm [resolvable:$true] %s26_s16 }
   0x4   :  { %20 = dma.hbm_to_vmem [thread:$0]  %s16_s11, 128, %s18_s13, [#allocation3]  }
   0x5   :  { %s343_s17 = smov [#allocation5]  }
   0x6   :  { %s28_s18 = sshll.u32 %s343_s17, 4  ;;  %s29_s18 = int_to_ptr.vmem [resolvable:$true] %s28_s18 }
   0x7   :  { %31 = dma.hbm_to_vmem [thread:$0]  %s27_s16, 128, %s29_s18, [#allocation6]  }
   0x8   :  { %336 = dma.done.wait [#allocation3], 128  }
   0x9   :  { %337 = vsyncadd [#allocation3], 4294967168 }
   0xa   :  { %338 = dma.done.wait [#allocation6], 128  }
   0xb   :  { %339 = vsyncadd [#allocation6], 4294967168  ;;  %v344_v0 = vmov 2   ;;  %v345_v1 = vmov 0   ;;  %v346_v2 = vmov 4   ;;  %v41_v3 = vld [vmem:[#allocation5] sm:$0xff] }
   0xc   :  { %238 = vset.pattern.permute.xlu1 %v344_v0  ;;  %236 = vset.pattern.permute.xlu0 %v345_v1  ;;  %v347_v4 = vmov 3   ;;  %v348_v5 = vmov 1   ;;  %v349_v6 = vmov 5   ;;  %v350_v7 = vmov 6   ;;  %v40_v25 = vld [vmem:[#allocation2] sm:$0xff]  ;;  %s365_s0 = smov [#allocation7]  }
   0xd   :  { %240 = vset.pattern.permute.xlu2 %v346_v2  ;;  %57 = vperm.xlu1 %238, %v41_v3   ;;  %v351_v8 = vmov 8   ;;  %v352_v9 = vmov 7   ;;  %v353_v10 = vmov 16   ;;  %v354_v11 = vmov 20   ;;  %s199_s1 = sshll.u32 %s365_s0, 4  ;;  %s201_s21 = sshll.u32 %s392_s2, 4  ;;  %s200_s1 = int_to_ptr.vmem [resolvable:$true] %s199_s1  ;;  %s202_s21 = int_to_ptr.hbm [resolvable:$true] %s201_s21 }
   0xe   :  { %44 = vperm.xlu0 %236, %v41_v3   ;;  %71 = vperm.xlu2 %240, %v41_v3   ;;  %v355_v12 = vmov 17   ;;  %v356_v13 = vmov 18   ;;  %v357_v14 = vmov 26   ;;  %v358_v15 = vmov 19  }
   0xf   :  { %v359_v16 = vmov 21   ;;  %v360_v17 = vmov 28   ;;  %v361_v18 = vmov 22   ;;  %v362_v19 = vmov 24  }
  0x10   :  { %v363_v20 = vmov 25   ;;  %v364_v21 = vmov 27   ;;  %v47_v26 = vperm.slane %v40_v25, 0  ;;  %v53_v27 = vperm.slane %v40_v25, 1 }
  0x11   :  { %v60_v29 = vperm.slane %v40_v25, 2  ;;  %v67_v34 = vperm.slane %v40_v25, 3  ;;  %v74_v36 = vperm.slane %v40_v25, 4  ;;  %v81_v40 = vperm.slane %v40_v25, 5 }
  0x12   :  { %v88_v41 = vperm.slane %v40_v25, 6  ;;  %v95_v44 = vperm.slane %v40_v25, 7 }
  0x15   :  { %239 = vset.pattern.permute.xlu1 %v347_v4 }
  0x16   :  { %237 = vset.pattern.permute.xlu0 %v348_v5  ;;  %64 = vperm.xlu1 %239, %v41_v3  }
  0x17   :  { %50 = vperm.xlu0 %237, %v41_v3   ;;  %241 = vset.pattern.permute.xlu2 %v349_v6 }
  0x18   :  { %78 = vperm.xlu2 %241, %v41_v3  }
  0x1e   :  { %242 = vset.pattern.permute.xlu1 %v350_v7 }
  0x1f   :  { %244 = vset.pattern.permute.xlu0 %v351_v8  ;;  %85 = vperm.xlu1 %242, %v41_v3  }
  0x20   :  { %99 = vperm.xlu0 %244, %v41_v3   ;;  %243 = vset.pattern.permute.xlu2 %v352_v9 }
  0x21   :  { %92 = vperm.xlu2 %243, %v41_v3  }
  0x27   :  { %245 = vset.pattern.permute.xlu1 %v353_v10 }
  0x28   :  { %249 = vset.pattern.permute.xlu0 %v354_v11  ;;  %108 = vperm.xlu1 %245, %v41_v3  }
  0x29   :  { %135 = vperm.xlu0 %249, %v41_v3   ;;  %246 = vset.pattern.permute.xlu2 %v355_v12 }
  0x2a   :  { %114 = vperm.xlu2 %246, %v41_v3  }
  0x30   :  { %247 = vset.pattern.permute.xlu1 %v356_v13 }
  0x31   :  { %254 = vset.pattern.permute.xlu0 %v357_v14  ;;  %121 = vperm.xlu1 %247, %v41_v3  }
  0x32   :  { %171 = vperm.xlu0 %254, %v41_v3   ;;  %248 = vset.pattern.permute.xlu2 %v358_v15 }
  0x33   :  { %128 = vperm.xlu2 %248, %v41_v3  }
  0x39   :  { %250 = vset.pattern.permute.xlu1 %v359_v16 }
  0x3a   :  { %257 = vset.pattern.permute.xlu0 %v360_v17  ;;  %142 = vperm.xlu1 %250, %v41_v3  }
  0x3b   :  { %251 = vset.pattern.permute.xlu2 %v361_v18 }
  0x3c   :  { %149 = vperm.xlu2 %251, %v41_v3  }
  0x42   :  { %252 = vset.pattern.permute.xlu1 %v362_v19 }
  0x43   :  { %158 = vperm.xlu1 %252, %v41_v3  }
  0x44   :  { %253 = vset.pattern.permute.xlu2 %v363_v20 }
  0x45   :  { %164 = vperm.xlu2 %253, %v41_v3  }
  0x4b   :  { %255 = vset.pattern.permute.xlu1 %v364_v21 }
  0x4c   :  { %178 = vperm.xlu1 %255, %v41_v3  }
  0x4d   :  { %256 = vset.pattern.permute.xlu2 %v360_v17 }
  0x4e   :  { %185 = vperm.xlu2 %256, %v41_v3  }
  0x68   :  { %v72_v22 = vpop.permute.xlu2 %71 }
  0x69   :  { %v75_v42 = vmul.f32 %v74_v36, %v72_v22 }
  0x72   :  { %v79_v28 = vpop.permute.xlu2 %78 }
  0x73   :  { %v82_v47 = vmul.f32 %v81_v40, %v79_v28 }
  0x7b   :  { %v93_v45 = vpop.permute.xlu2 %92 }
  0x7c   :  { %v96_v51 = vmul.f32 %v95_v44, %v93_v45 }
  0x7f   :  { %v58_v24 = vpop.permute.xlu1 %57 }
  0x80   :  { %v45_v23 = vpop.permute.xlu0 %44  ;;  %v61_v35 = vmul.f32 %v60_v29, %v58_v24 }
  0x81   :  { %v48_v32 = vmul.f32 %v47_v26, %v45_v23 }
  0x84   :  { %v115_v58 = vpop.permute.xlu2 %114 }
  0x88   :  { %v65_v31 = vpop.permute.xlu1 %64 }
  0x89   :  { %v51_v30 = vpop.permute.xlu0 %50  ;;  %v68_v39 = vmul.f32 %v67_v34, %v65_v31 }
  0x8a   :  { %v54_v33 = vmul.f32 %v53_v27, %v51_v30 }
  0x8c   :  { %v55_v37 = vadd.f32 %v54_v33, %v48_v32 }
  0x8d   :  { %v129_v5 = vpop.permute.xlu2 %128 }
  0x8e   :  { %v62_v38 = vadd.f32 %v61_v35, %v55_v37 }
  0x90   :  { %v69_v43 = vadd.f32 %v68_v39, %v62_v38 }
  0x91   :  { %v86_v48 = vpop.permute.xlu1 %85 }
  0x92   :  { %v76_v46 = vadd.f32 %v75_v42, %v69_v43  ;;  %v89_v49 = vmul.f32 %v88_v41, %v86_v48  ;;  %v100_v53 = vpop.permute.xlu0 %99 }
  0x94   :  { %v83_v50 = vadd.f32 %v82_v47, %v76_v46 }
  0x96   :  { %v90_v52 = vadd.f32 %v89_v49, %v83_v50  ;;  %v150_v18 = vpop.permute.xlu2 %149 }
  0x98   :  { %v97_v54 = vadd.f32 %v96_v51, %v90_v52 }
  0x9a   :  { %v102_v55 = vadd.f32 %v100_v53, %v97_v54  ;;  %v109_v57 = vpop.permute.xlu1 %108 }
  0x9b   :  { %v136_v9 = vpop.permute.xlu0 %135 }
  0x9c   :  { %v103_v56 = vmul.f32 0.5, %v102_v55 }
  0x9e   :  { %258 = vtanh.f32 %v103_v56 }
  0x9f   :  { %v165_v25 = vpop.permute.xlu2 %164 }
  0xa3   :  { %v122_v61 = vpop.permute.xlu1 %121 }
  0xa4   :  { %v259_v59 = vpop.eup %258  ;;  %v172_v30 = vpop.permute.xlu0 %171 }
  0xa5   :  { %v105_v60 = vmul.f32 0.5, %v259_v59 }
  0xa7   :  { %v106_v62 = vadd.f32 0.5, %v105_v60 }
  0xa8   :  { %v186_v39 = vpop.permute.xlu2 %185 }
  0xa9   :  { %v111_v63 = vperm.slane %v106_v62, 0  ;;  %v117_v0 = vperm.slane %v106_v62, 1  ;;  %v124_v1 = vperm.slane %v106_v62, 2  ;;  %v131_v4 = vperm.slane %v106_v62, 3 }
  0xaa   :  { %v138_v8 = vperm.slane %v106_v62, 4  ;;  %v145_v15 = vperm.slane %v106_v62, 5 }
  0xab   :  { %v112_v2 = vmul.f32 %v111_v63, %v109_v57  ;;  %v118_v3 = vmul.f32 %v117_v0, %v115_v58  ;;  %v125_v7 = vmul.f32 %v124_v1, %v122_v61  ;;  %v132_v11 = vmul.f32 %v131_v4, %v129_v5 }
  0xac   :  { %v143_v12 = vpop.permute.xlu1 %142  ;;  %v139_v14 = vmul.f32 %v138_v8, %v136_v9 }
  0xad   :  { %v119_v6 = vadd.f32 %v118_v3, %v112_v2  ;;  %v146_v17 = vmul.f32 %v145_v15, %v143_v12 }
  0xaf   :  { %v126_v10 = vadd.f32 %v125_v7, %v119_v6 }
  0xb1   :  { %v133_v13 = vadd.f32 %v132_v11, %v126_v10 }
  0xb3   :  { %v140_v16 = vadd.f32 %v139_v14, %v133_v13 }
  0xb5   :  { %v147_v19 = vadd.f32 %v146_v17, %v140_v16  ;;  %v159_v22 = vpop.permute.xlu1 %158 }
  0xb7   :  { %v152_v20 = vadd.f32 %v150_v18, %v147_v19 }
  0xb9   :  { %v153_v21 = vmul.f32 0.5, %v152_v20 }
  0xbb   :  { %260 = vtanh.f32 %v153_v21 }
  0xbe   :  { %v179_v34 = vpop.permute.xlu1 %178 }
  0xc1   :  { %v261_v23 = vpop.eup %260 }
  0xc2   :  { %v155_v24 = vmul.f32 0.5, %v261_v23 }
  0xc4   :  { %v156_v26 = vadd.f32 0.5, %v155_v24 }
  0xc6   :  { %v161_v27 = vperm.slane %v156_v26, 0  ;;  %v167_v28 = vperm.slane %v156_v26, 1  ;;  %v174_v29 = vperm.slane %v156_v26, 2  ;;  %v181_v33 = vperm.slane %v156_v26, 3 }
  0xc8   :  { %v162_v31 = vmul.f32 %v161_v27, %v159_v22  ;;  %v168_v32 = vmul.f32 %v167_v28, %v165_v25  ;;  %v175_v36 = vmul.f32 %v174_v29, %v172_v30  ;;  %v182_v37 = vmul.f32 %v181_v33, %v179_v34 }
  0xca   :  { %v169_v35 = vadd.f32 %v168_v32, %v162_v31 }
  0xcc   :  { %v176_v38 = vadd.f32 %v175_v36, %v169_v35 }
  0xce   :  { %v183_v40 = vadd.f32 %v182_v37, %v176_v38 }
  0xd0   :  { %v188_v41 = vadd.f32 %v186_v39, %v183_v40 }
  0xd2   :  { %v189_v42 = vmul.f32 0.5, %v188_v41 }
  0xd4   :  { %262 = vtanh.f32 %v189_v42 }
  0xda   :  { %v263_v43 = vpop.eup %262 }
  0xdb   :  { %v191_v44 = vmul.f32 0.5, %v263_v43 }
  0xdd   :  { %v192_v45 = vadd.f32 0.5, %v191_v44 }
  0xdf   :  { %193 = vst [vmem:[#allocation7] sm:$0x1] %v192_v45 }
  0xe0   :  { %204 = dma.vmem_to_hbm [thread:$0]  %s200_s1, 16, %s202_s21, [#allocation4]  }
  0xe1   :  { %340 = dma.done.wait [#allocation4], 16  }
  0xe2   :  { %341 = vsyncadd [#allocation4], 4294967280 }
  0xe3   :  { %209 = vsyncpa [#allocation3], 1 }
  0xe4   :  { %210 = vsyncpa [#allocation6], 1 }
  0xe5   :  { %211 = vsyncpa [#allocation4], 1 }

</bundles_post_ra>
